<compile_context>
chip_gen: v6e
topology: v6e:2x2x1
jax: 0.10.0
libtpu: 0.0.40
codegen_flags: <defaults>
</compile_context>

<pallas_src>
import functools

import jax
import jax.numpy as jnp
from jax.experimental import pallas as pl
from jax.experimental.pallas import tpu as pltpu


def _ttm_kernel(ys_ref, yt_ref, out_ref, *, l, batch, block_rows):
    i = pl.program_id(0)

    # [TB, C] logits; class axis (dim=1) maps to lanes.
    ys = ys_ref[...].astype(jnp.float32)
    zt = yt_ref[...].astype(jnp.float32) * l  # softmax(y_t)**l renorm == softmax(l*y_t)

    # --- student: logsumexp pieces (log_softmax = ys_sh - log S) ---
    ys_sh = ys - jnp.max(ys, axis=1, keepdims=True)
    log_s = jnp.log(jnp.sum(jnp.exp(ys_sh), axis=1, keepdims=True))      # [TB, 1]

    # --- teacher: softmax(l*y_t) pieces ---
    zt_sh = zt - jnp.max(zt, axis=1, keepdims=True)
    e_t = jnp.exp(zt_sh)
    t_sum = jnp.sum(e_t, axis=1, keepdims=True)                          # [TB, 1]

    # --- folded KL: sum_c p_t*(log_pt - log_ps)
    #             = (sum_c e_t*(zt_sh - ys_sh)) / T - log T + log S  ---
    row_dot = jnp.sum(e_t * (zt_sh - ys_sh), axis=1, keepdims=True)      # [TB, 1]
    kl = row_dot * pl.reciprocal(t_sum) - jnp.log(t_sum) + log_s         # [TB, 1]

    # Mask rows past the true batch size (last, possibly partial, block reads
    # unspecified out-of-bounds data; jnp.where keeps NaN/Inf from leaking).
    row = i * block_rows + jax.lax.broadcasted_iota(jnp.int32, kl.shape, 0)
    out_ref[...] = jnp.where(row < batch, kl, 0.0)


def _sublane_multiple(itemsize):
    """Packed-sublane multiple for the input dtype: 8 f32, 16 bf16, 32 int8."""
    return max(8, 32 // max(int(itemsize), 1))


def _vmem_plan():
    """(tiling_budget_bytes, vmem_limit_bytes), generation-aware."""
    try:
        cap = int(pltpu.get_tpu_info().vmem_capacity_bytes)
    except Exception:
        cap = 64 * 1024 * 1024  # conservative (v7x-sized) fallback
    if cap >= 100 * 1024 * 1024:            # v5e / v6e: 128 MiB physical VMEM
        return 64 * 1024 * 1024, 96 * 1024 * 1024
    return 24 * 1024 * 1024, 48 * 1024 * 1024  # v7x: 64 MiB physical VMEM


def _choose_block_rows(batch, n_classes, in_itemsize, budget, sub):
    """Largest row-tile fitting pipelined inputs + folded f32 temps in budget."""
    # 2 inputs x 2 pipeline buffers at input dtype + ~5 live f32 [TB, C] temps.
    bytes_per_row = n_classes * (2 * 2 * in_itemsize + 5 * 4)
    tb = int(budget // max(bytes_per_row, 1))
    tb = max(sub, tb - tb % sub)
    # Never exceed the (rounded-up) batch.
    b_rounded = -(-batch // sub) * sub
    tb = min(tb, b_rounded)
    # Guarantee >= 2 grid blocks when possible so the "parallel" batch axis
    # actually shards across v7x's two TensorCores (harmless on v5e/v6e).
    if tb >= batch and batch > sub:
        half = -(-batch // 2)
        tb = -(-half // sub) * sub
    return max(sub, tb)


def ttm_loss(y_s, y_t, l=0.1, block_rows=None):
    """Pallas implementation of TTM.forward(y_s, y_t). Inputs: [B, C] logits."""
    assert y_s.shape == y_t.shape and y_s.ndim == 2
    b, c = y_s.shape
    itemsize = max(jnp.dtype(y_s.dtype).itemsize, jnp.dtype(y_t.dtype).itemsize)
    sub = _sublane_multiple(itemsize)
    budget, vmem_limit = _vmem_plan()

    if block_rows is None:
        tb = _choose_block_rows(b, c, itemsize, budget, sub)
    else:
        tb = max(sub, block_rows - block_rows % sub)

    n_blocks = pl.cdiv(b, tb)

    partial = pl.pallas_call(
        functools.partial(_ttm_kernel, l=float(l), batch=b, block_rows=tb),
        out_shape=jax.ShapeDtypeStruct((n_blocks * tb, 1), jnp.float32),
        grid=(n_blocks,),
        in_specs=[
            pl.BlockSpec((tb, c), lambda i: (i, 0)),
            pl.BlockSpec((tb, c), lambda i: (i, 0)),
        ],
        out_specs=pl.BlockSpec((tb, 1), lambda i: (i, 0)),
        compiler_params=pltpu.CompilerParams(
            dimension_semantics=("parallel",),
            vmem_limit_bytes=vmem_limit,
        ),
    )(y_s, y_t)

    # Invalid (masked) rows contributed exactly 0; divide by the true batch.
    return jnp.sum(partial) / b


def ttm_loss_ref(y_s, y_t, l=0.1):
    """Pure-JAX reference (mirrors the PyTorch forward exactly)."""
    y_s = y_s.astype(jnp.float32)
    y_t = y_t.astype(jnp.float32)
    log_p_s = jax.nn.log_softmax(y_s, axis=1)
    p_t = jnp.power(jax.nn.softmax(y_t, axis=1), l)
    p_t = p_t / jnp.sum(p_t, axis=1, keepdims=True)
    kl = jnp.sum(p_t * (jnp.log(p_t) - log_p_s), axis=1)
    return jnp.mean(kl)


if __name__ == "__main__":
    B, C = 16, 128  # small: 16 rows of logits over 128 classes
    key = jax.random.PRNGKey(0)
    k1, k2 = jax.random.split(key)
    y_s = jax.random.normal(k1, (B, C), dtype=jnp.float32)
    y_t = jax.random.normal(k2, (B, C), dtype=jnp.float32)

    ref = ttm_loss_ref(y_s, y_t, l=0.1)

    # 1) auto-sized tile (>=2 blocks so the parallel batch axis is exercised)
    loss = ttm_loss(y_s, y_t, l=0.1)
    jax.block_until_ready(loss)
    assert jnp.allclose(loss, ref, atol=2e-5, rtol=1e-4), (loss, ref)

    # 2) forced small tile: exercises the multi-block grid + partial-sum path
    loss2 = ttm_loss(y_s, y_t, l=0.1, block_rows=8)
    jax.block_until_ready(loss2)
    assert jnp.allclose(loss2, ref, atol=2e-5, rtol=1e-4), (loss2, ref)

    # 3) batch not divisible by tile: exercises the in-kernel row-mask path
    loss3 = ttm_loss(y_s[:12], y_t[:12], l=0.1, block_rows=8)
    jax.block_until_ready(loss3)
    ref3 = ttm_loss_ref(y_s[:12], y_t[:12], l=0.1)
    assert jnp.allclose(loss3, ref3, atol=2e-5, rtol=1e-4), (loss3, ref3)

    # 4) bf16 logits (halved HBM traffic; sublane multiple 16 path)
    ys16, yt16 = y_s.astype(jnp.bfloat16), y_t.astype(jnp.bfloat16)
    loss4 = ttm_loss(ys16, yt16, l=0.1)
    jax.block_until_ready(loss4)
    ref4 = ttm_loss_ref(ys16, yt16, l=0.1)
    assert jnp.allclose(loss4, ref4, atol=1e-4, rtol=1e-3), (loss4, ref4)

    print("KERNEL_OK")
</pallas_src>

<mosaic_0001>
module attributes {stable_mosaic.version = 11 : i64} {
  func.func @_ttm_kernel(%arg0: i32, %arg1: memref<8x128xf32, #tpu.memory_space<vmem>>, %arg2: memref<8x128xf32, #tpu.memory_space<vmem>>, %arg3: memref<8x1xf32, #tpu.memory_space<vmem>>) attributes {dimension_semantics = [#tpu.dimension_semantics<parallel>], iteration_bounds = array<i64: 2>, scalar_prefetch = 0 : i64, scratch_operands = 0 : i64, tpu.core_type = #tpu.core_type<tc>, window_params = [{transform_indices = @transform_0, window_bounds = array<i64: 8, 128>}, {transform_indices = @transform_1, window_bounds = array<i64: 8, 128>}, {transform_indices = @transform_2, window_bounds = array<i64: 8, 1>}]} {
    %c0 = arith.constant 0 : index
    %c0_0 = arith.constant 0 : index
    %0 = vector.load %arg1[%c0, %c0_0] : memref<8x128xf32, #tpu.memory_space<vmem>>, vector<8x128xf32>
    %c0_1 = arith.constant 0 : index
    %c0_2 = arith.constant 0 : index
    %1 = vector.load %arg2[%c0_1, %c0_2] : memref<8x128xf32, #tpu.memory_space<vmem>>, vector<8x128xf32>
    %cst = arith.constant 1.000000e-01 : f32
    %2 = vector.broadcast %cst : f32 to vector<8x128xf32>
    %3 = arith.mulf %1, %2 : vector<8x128xf32>
    %cst_3 = arith.constant dense<0xFF800000> : vector<8xf32>
    %4 = vector.multi_reduction <maximumf>, %0, %cst_3 [1] : vector<8x128xf32> to vector<8xf32>
    %5 = vector.shape_cast %4 : vector<8xf32> to vector<8x1xf32>
    %6 = vector.broadcast %5 : vector<8x1xf32> to vector<8x128xf32>
    %7 = arith.subf %0, %6 : vector<8x128xf32>
    %8 = math.exp %7 : vector<8x128xf32>
    %cst_4 = arith.constant dense<0.000000e+00> : vector<8xf32>
    %9 = vector.multi_reduction <add>, %8, %cst_4 [1] : vector<8x128xf32> to vector<8xf32>
    %10 = vector.shape_cast %9 : vector<8xf32> to vector<8x1xf32>
    %11 = math.log %10 : vector<8x1xf32>
    %cst_5 = arith.constant dense<0xFF800000> : vector<8xf32>
    %12 = vector.multi_reduction <maximumf>, %3, %cst_5 [1] : vector<8x128xf32> to vector<8xf32>
    %13 = vector.shape_cast %12 : vector<8xf32> to vector<8x1xf32>
    %14 = vector.broadcast %13 : vector<8x1xf32> to vector<8x128xf32>
    %15 = arith.subf %3, %14 : vector<8x128xf32>
    %16 = math.exp %15 : vector<8x128xf32>
    %cst_6 = arith.constant dense<0.000000e+00> : vector<8xf32>
    %17 = vector.multi_reduction <add>, %16, %cst_6 [1] : vector<8x128xf32> to vector<8xf32>
    %18 = vector.shape_cast %17 : vector<8xf32> to vector<8x1xf32>
    %19 = arith.subf %15, %7 : vector<8x128xf32>
    %20 = arith.mulf %16, %19 : vector<8x128xf32>
    %cst_7 = arith.constant dense<0.000000e+00> : vector<8xf32>
    %21 = vector.multi_reduction <add>, %20, %cst_7 [1] : vector<8x128xf32> to vector<8xf32>
    %22 = vector.shape_cast %21 : vector<8xf32> to vector<8x1xf32>
    %23 = tpu.reciprocal %18 : vector<8x1xf32> -> vector<8x1xf32>
    %24 = arith.mulf %22, %23 : vector<8x1xf32>
    %25 = math.log %18 : vector<8x1xf32>
    %26 = arith.subf %24, %25 : vector<8x1xf32>
    %27 = arith.addf %26, %11 : vector<8x1xf32>
    %c8_i32 = arith.constant 8 : i32
    %28 = arith.muli %arg0, %c8_i32 : i32
    %29 = tpu.iota {dimensions = array<i32: 0>} : vector<8x1xi32>
    %30 = vector.broadcast %28 : i32 to vector<8x1xi32>
    %31 = arith.addi %30, %29 : vector<8x1xi32>
    %c16_i32 = arith.constant 16 : i32
    %32 = vector.broadcast %c16_i32 : i32 to vector<8x1xi32>
    %33 = arith.cmpi slt, %31, %32 : vector<8x1xi32>
    %cst_8 = arith.constant 0.000000e+00 : f32
    %34 = vector.broadcast %cst_8 : f32 to vector<8x1xf32>
    %35 = arith.select %33, %27, %34 : vector<8x1xi1>, vector<8x1xf32>
    %c0_9 = arith.constant 0 : index
    %c0_10 = arith.constant 0 : index
    %36 = vector.load %arg3[%c0_9, %c0_10] : memref<8x1xf32, #tpu.memory_space<vmem>>, vector<8x1xf32>
    tpu.vector_store %arg3[%c0_9, %c0_10], %35 {strides = array<i32>} : memref<8x1xf32, #tpu.memory_space<vmem>>, vector<8x1xf32>,
    return
  }
  func.func @transform_0(%arg0: i32) -> (i32, i32) {
    %c0_i32 = arith.constant 0 : i32
    %c0_i32_0 = arith.constant 0 : i32
    return %arg0, %c0_i32 : i32, i32
  }
  func.func @transform_1(%arg0: i32) -> (i32, i32) {
    %c0_i32 = arith.constant 0 : i32
    %c0_i32_0 = arith.constant 0 : i32
    return %arg0, %c0_i32 : i32, i32
  }
  func.func @transform_2(%arg0: i32) -> (i32, i32) {
    %c0_i32 = arith.constant 0 : i32
    %c0_i32_0 = arith.constant 0 : i32
    return %arg0, %c0_i32 : i32, i32
  }
}

</mosaic_0001>

<bundles_post_ra>
// kernel: tpu_custom_call.1
= control target key start
LH: loop header
LB: loop body
LE: loop exit
PB: predicated region body
PF: predicated region fallthrough
CT: control target
= control target key end

     0   :  { %7 = vsyncpa [#allocation3], 0  ;;  %s656_s0 = inlined_call_operand.hbm [shape: f32[16,128], index: 0, kind: input, shape index: {}]   ;;  %s657_s1 = inlined_call_operand.hbm [shape: f32[16,128], index: 1, kind: input, shape index: {}]   ;;  %s658_s2 = inlined_call_operand.vmem [shape: f32[16,1], index: 2, kind: output, shape index: {}]  }
   0x1   :  { %9 = vsyncpa [#allocation3 + $0x1], 0 }
   0x2   :  { %10 = vsyncpa [#allocation5], 0 }
   0x3   :  { %12 = vsyncpa [#allocation5 + $0x1], 0  ;;  %s503_s9 = smov 0   ;;  %s505_s10 = smov 0  }
   0x4   :  { %s507_s11 = smov 0   ;;  %s509_s12 = smov 0  }
   0x5 LB: > { %s522_s13 = sadd.s32 4294967295, %s484_s12   ;;  %s525_s14 = sadd.s32 1, %s484_s12   ;;  %s484_s12 = sphi %s509_s12, %s670_s12   ;;  %s480_s11 = sphi %s507_s11, %s669_s11   ;;  %s476_s10 = sphi %s505_s10, %s668_s10   ;;  %s472_s9 = sphi %s503_s9, %s667_s9  }
   0x6   : > { %s22_s15 = ssub.s32 %s484_s12, %s525_s14  ;;  %s25_s16 = sadd.s32 1, %s480_s11 }
   0x7   : > { %p23_p0 = scmp.eq.s32.totalorder %s22_s15, 0  ;;  %p32_p1 = scmp.ne.s32.totalorder %s480_s11, %s476_s10 }
   0x8   : > { %p33_p2 = scmp.eq.s32.totalorder %s484_s12, 0  ;;  %p38_p3 = scmp.ne.s32.totalorder %s476_s10, %s472_s9 }
   0x9   : > { %s535_s17 = scalar_select %p23_p0, %s480_s11, %s25_s16  }
   0xa   : > { %p34_p4 = por %p33_p2, %p32_p1  ;;  %p39_p5 = scmp.eq.s32.totalorder %s522_s13, 0 }
   0xb   : > { %p347_p6 = scmp.lt.s32.totalorder %s484_s12, 2  ;;  %s544_s19 = sand.u32 1, %s480_s11  }
   0xc   : > { %p539_p7 = por %p39_p5, %p38_p3  ;;  %s325_s20 = sshll.u32 %s544_s19, 3 }
   0xd   : > { %s326_s21 = sshll.u32 %s484_s12, 7  ;;  %s118_s25 = scalar_lea.vmem [#allocation2], %s325_s20 }
   0xe   : > { %s660_s18 = scalar_select %p539_p7, 1, 0 }
   0xf   : > { %s553_s24 = scalar_lea.hbm %s656_s0, %s326_s21  ;;  %s125_s26 = sshll.u32 %s118_s25, 4  ;;  %s557_s26 = int_to_ptr.vmem [resolvable:$true] %s125_s26 }
  0x10   : > { %p559_p8 = pnand %p347_p6, %p34_p4  ;;  %s115_s28 = scalar_lea.sflag [#allocation3], %s544_s19 }
  0x11   : > { %s390_s29 = scalar_lea.hbm %s553_s24, 128  ;;  %s395_s4 = scalar_lea.hbm %s656_s0, 256 }
  0x12   : > { %p391_p11 = scmp.ne.s32.totalorder %s553_s24, %s390_s29  ;;  %p392_p12 = pneg %p559_p8 }
  0x13   : > { %p396_p1 = scmp.lt.s32.totalorder %s553_s24, %s656_s0  ;;  %p397_p2 = scmp.lt.s32.totalorder %s395_s4, %s390_s29 }
  0x14   : > { %p393_p13 = pnand %p392_p12, %p391_p11 }
  0x15   : > { %p398_p3 = por %p397_p2, %p396_p1 }
  0x16   : > { %p394_p0 = pneg %p393_p13 }
  0x18   : > { %p399_p4 = pnand %p398_p3, %p394_p0 }
  0x1a   : > { %402 = shalt.err (!%p399_p4)
}
  0x1b   : > { %s403_s7 = scalar_lea.vmem %s557_s26, 128  ;;  %s486_s8 = smov [#allocation2]  }
  0x1c   : > { %p404_p5 = scmp.ne.s32.totalorder %s557_s26, %s403_s7  ;;  %s408_s9 = sshll.u32 %s486_s8, 4  ;;  %s409_s9 = int_to_ptr.vmem [resolvable:$false] %s408_s9 }
  0x1d   : > { %s410_s15 = scalar_lea.vmem %s409_s9, 256  ;;  %p411_p13 = scmp.lt.s32.totalorder %s557_s26, %s409_s9 }
  0x1e   : > { %p406_p6 = pnand %p404_p5, %p392_p12  ;;  %p412_p9 = scmp.lt.s32.totalorder %s410_s15, %s403_s7 }
  0x20   : > { %p407_p11 = pneg %p406_p6  ;;  %p413_p10 = por %p412_p9, %p411_p13 }
  0x22   : > { %p414_p1 = pnand %p413_p10, %p407_p11 }
  0x24   : > { %417 = shalt.err (!%p414_p1)
}
  0x25   : > { %343 = dma.hbm_to_vmem [thread:$0]  (!%p559_p8), %s553_s24, 128, %s557_s26, %s115_s28  }
  0x26   : > { %p662_p0 = scmp.lt.s32.totalorder %s484_s12, 3  ;;  %p663_p2 = scmp.ge.s32.totalorder %s484_s12, 1 }
  0x27   : > { %s603_s25 = scalar_lea.hbm %s657_s1, %s326_s21  ;;  %s136_s29 = scalar_lea.vmem [#allocation4], %s325_s20 }
  0x28   : > { %p594_p3 = pnand %p663_p2, %p662_p0  ;;  %s143_s30 = sshll.u32 %s136_s29, 4  ;;  %s144_s30 = int_to_ptr.vmem [resolvable:$true] %s143_s30 }
  0x29   : > { %s133_s24 = scalar_lea.sflag [#allocation5], %s544_s19  ;;  %s418_s26 = scalar_lea.hbm %s603_s25, 128 }
  0x2a   : > { %s664_s16 = scalar_select %p594_p3, 1, 0 }
  0x2b   : > { %p419_p9 = scmp.ne.s32.totalorder %s603_s25, %s418_s26  ;;  %s423_s3 = scalar_lea.hbm %s657_s1, 256 }
  0x2c   : > { %p424_p5 = scmp.lt.s32.totalorder %s603_s25, %s657_s1  ;;  %p425_p6 = scmp.lt.s32.totalorder %s423_s3, %s418_s26 }
  0x2d   : > { %p421_p10 = pnand %p419_p9, %p392_p12 }
  0x2e   : > { %p426_p11 = por %p425_p6, %p424_p5 }
  0x2f   : > { %p422_p4 = pneg %p421_p10 }
  0x31   : > { %p427_p13 = pnand %p426_p11, %p422_p4 }
  0x33   : > { %430 = shalt.err (!%p427_p13)
}
  0x34   : > { %s431_s20 = scalar_lea.vmem %s144_s30, 128  ;;  %s487_s19 = smov [#allocation4]  }
  0x35   : > { %p432_p1 = scmp.ne.s32.totalorder %s144_s30, %s431_s20  ;;  %s436_s5 = sshll.u32 %s487_s19, 4  ;;  %s437_s5 = int_to_ptr.vmem [resolvable:$false] %s436_s5 }
  0x36   : > { %s438_s6 = scalar_lea.vmem %s437_s5, 256  ;;  %p439_p9 = scmp.lt.s32.totalorder %s144_s30, %s437_s5 }
  0x37   : > { %p434_p0 = pnand %p432_p1, %p392_p12  ;;  %p440_p10 = scmp.lt.s32.totalorder %s438_s6, %s431_s20 }
  0x39   : > { %p435_p2 = pneg %p434_p0  ;;  %p441_p7 = por %p440_p10, %p439_p9 }
  0x3b   : > { %p442_p3 = pnand %p441_p7, %p435_p2 }
  0x3d   : > { %445 = shalt.err (!%p442_p3)
}
  0x3e   : > { %346 = dma.hbm_to_vmem [thread:$0]  (!%p559_p8), %s603_s25, 128, %s144_s30, %s133_s24  }
  0x3f   : > { %p665_p4 = scmp.ne.s32.totalorder %s664_s16, 0 }
  0x40   : > { %s154_s7 = sand.u32 (!%p665_p4), 1, %s476_s10   ;;  %p666_p12 = scmp.ne.s32.totalorder (!%p665_p4), %s660_s18, 0 }
  0x41   : > { %152 = sbr.rel (%p665_p4) target bundleno = 394 (0x18a), region = 28  ;;  %s330_s8 = sshll.u32 (!%p665_p4), %s154_s7, 3 }
  0x42   : > { %s155_s9 = scalar_lea.sflag (!%p665_p4), [#allocation3], %s154_s7  ;;  %s158_s15 = scalar_lea.vmem (!%p665_p4), [#allocation2], %s330_s8 }
  0x46   : > { %463 = dma.done.wait (%p666_p12), %s155_s9, 128  }
  0x47   : > { %465 = vsyncadd (%p666_p12), %s155_s9, 4294967168  ;;  %s164_s22 = scalar_lea.sflag [#allocation5], %s154_s7  ;;  %s167_s23 = scalar_lea.vmem [#allocation4], %s330_s8 }
  0x48   : > { %467 = dma.done.wait (%p666_p12), %s164_s22, 128  }
  0x49   : > { %469 = vsyncadd (%p666_p12), %s164_s22, 4294967168  ;;  %v197_v0 = vld [vmem:[%s167_s23] sm:$0xff]  ;;  %v196_v2 = vld [vmem:[%s158_s15] sm:$0xff]  ;;  %v226_v15 = vlaneseq  ;;  %p192_p7 = scmp.lt.s32.totalorder %s522_s13, 1  ;;  %s333_s18 = sshll.u32 %s522_s13, 3  ;;  %vm232_vm1 = vcmask 7168  }
  0x4a   : > { %v198_v1 = vmul.f32 0.1, %v197_v0  ;;  %v228_v17 = vstv %s333_s18 }
  0x4b   : > { %v227_v16 = vshrl.u32 %v226_v15, 7  ;;  %s672_s13 = smov (!%p192_p7, %s522_s13), 1 }
  0x4c   : > { %208 = vmax.xlane.f32.xlu0 %v198_v1  ;;  %s332_s27 = sshll.u32 %s672_s13, 3 }
  0x4d   : > { %v229_v23 = vadd.s32 %v228_v17, %v227_v16  ;;  %s195_s29 = scalar_lea.vmem %s658_s2, %s332_s27 }
  0x4f   : > { %vm230_vm0 = vcmp.lt.s32.totalorder %v229_v23, 16 }
  0x50   : > { %199 = vmax.xlane.f32.xlu0 %v196_v2 }
  0xd5   : > { %v209_v3 = vpop.xlane.xlu0 %208 }
  0xd6   : > { %v210_v4 = vsub.f32 %v198_v1, %v209_v3 }
  0xd8   : > { %v211_v5 = vmul.f32 1.442695, %v210_v4 }
  0xd9   : > { %v200_v6 = vpop.xlane.xlu0 %199 }
  0xda   : > { %380 = vpow2.f32 %v211_v5  ;;  %v201_v7 = vsub.f32 %v196_v2, %v200_v6 }
  0xdc   : > { %v202_v8 = vmul.f32 1.442695, %v201_v7  ;;  %v215_v9 = vsub.f32 %v210_v4, %v201_v7 }
  0xde   : > { %382 = vpow2.f32 %v202_v8 }
  0xe7   : > { %v381_v10 = vpop.eup %380 }
  0xe8   : > { %213 = vadd.xlane.f32.xlu1 %v381_v10  ;;  %v216_v11 = vmul.f32 %v381_v10, %v215_v9 }
  0xea   : > { %217 = vadd.xlane.f32.xlu0 %v216_v11 }
  0xeb   : > { %v383_v12 = vpop.eup %382 }
  0xec   : > { %204 = vadd.xlane.f32.xlu1 %v383_v12 }
 0x171   : > { %v214_v13 = vpop.xlane.xlu1 %213 }
 0x172   : > { %384 = vrcp.f32 %v214_v13 }
 0x173   : > { %386 = vlog2.f32 %v214_v13  ;;  %v218_v19 = vpop.xlane.xlu0 %217 }
 0x175   : > { %v205_v14 = vpop.xlane.xlu1 %204 }
 0x176   : > { %388 = vlog2.f32 %v205_v14 }
 0x17f   : > { %v385_v18 = vpop.eup %384 }
 0x180   : > { %v387_v20 = vpop.eup %386  ;;  %v220_v21 = vmul.f32 %v385_v18, %v218_v19 }
 0x181   : > { %v222_v22 = vmul.f32 0.6931472, %v387_v20 }
 0x183   : > { %v389_v24 = vpop.eup %388  ;;  %v223_v25 = vsub.f32 %v220_v21, %v222_v22 }
 0x184   : > { %v207_v26 = vmul.f32 0.6931472, %v389_v24 }
 0x186   : > { %v224_v27 = vadd.f32 %v223_v25, %v207_v26 }
 0x188   : > { %v231_v28 = vsel %vm230_vm0, %v224_v27, 0.0 }
 0x189   : > { %233 = vst.msk [vmem:[%s195_s29] sm:$0xff] %vm232_vm1, %v231_v28 }
 0x18a PF: > { %p15_p8 = scmp.ge.s32.totalorder %s525_s14, 4   ;;  %s667_s9 = smov %s476_s10 }
 0x18b   : > { %s668_s10 = smov %s480_s11  ;;  %s669_s11 = smov %s535_s17 }
 0x18c   : > { %s670_s12 = smov %s525_s14  ;;  %17 = sbr.rel (!%p15_p8) target bundleno = 5 (0x5), region = 81 }
 0x191   :  { %253 = vsyncpa [#allocation3], 1 }
 0x192   :  { %255 = vsyncpa [#allocation3 + $0x1], 1 }
 0x193   :  { %256 = vsyncpa [#allocation5], 1 }
 0x194   :  { %258 = vsyncpa [#allocation5 + $0x1], 1 }

</bundles_post_ra>
